<compile_context>
chip_gen: v5e
topology: v5e:2x2
jax: 0.10.0
libtpu: 0.0.40
codegen_flags: <defaults>
</compile_context>

<pallas_src>
import functools

import jax
import jax.numpy as jnp
from jax.experimental import pallas as pl
from jax.experimental.pallas import tpu as pltpu

_LANE = 128


def _round_up(x, m):
    return ((x + m - 1) // m) * m


def _round_down(x, m):
    return (x // m) * m


def _vmem_capacity_bytes():
    """Physical per-core VMEM; conservative fallback if the query is unavailable."""
    try:
        cap = int(pltpu.get_tpu_info().vmem_capacity_bytes)
        if cap > 0:
            return cap
    except Exception:
        pass
    return 64 * 1024 * 1024  # v7x per-TensorCore VMEM (smallest of v5e/v6e/v7x)


def _gap_kernel_single(x_ref, o_ref, *, inv_hw):
    # x_ref: (rows, HW) block of the (N*C, H*W) input; o_ref: (rows, 1).
    # Widening fused into the reduce (no f32 copy of the whole tile); single scale
    # on the already-reduced column.
    s = jnp.sum(x_ref[...], axis=-1, keepdims=True, dtype=jnp.float32)
    o_ref[...] = (s * inv_hw).astype(o_ref.dtype)


def _gap_kernel_chunked(x_ref, o_ref, acc_ref, *, hw_total, hw_block):
    # x_ref: (rows, hw_block) spatial chunk; acc_ref: (rows, 1) fp32 accumulator.
    k = pl.program_id(1)

    @pl.when(k == 0)
    def _():
        acc_ref[...] = jnp.zeros_like(acc_ref)

    x = x_ref[...]
    if hw_total % hw_block != 0:
        # Mask the out-of-range lanes of the final (partial) spatial chunk so padded
        # garbage does not contaminate the per-row sums.
        lane = jax.lax.broadcasted_iota(jnp.int32, x.shape, dimension=1)
        x = jnp.where(k * hw_block + lane < hw_total, x, jnp.zeros_like(x))

    acc_ref[...] += jnp.sum(x, axis=-1, keepdims=True, dtype=jnp.float32)

    @pl.when(k == pl.num_programs(1) - 1)
    def _():
        o_ref[...] = (acc_ref[...] * (1.0 / hw_total)).astype(o_ref.dtype)


def global_avg_pool2d(x, *, vmem_tile_budget_bytes=None):
    """Pallas equivalent of F.adaptive_avg_pool2d(x, 1).view(N, -1) (NCHW input)."""
    N, C, H, W = x.shape
    HW = H * W
    R = N * C
    in_item = x.dtype.itemsize
    out_item = in_item
    hw_pad = _round_up(HW, _LANE)

    vmem_cap = _vmem_capacity_bytes()
    if vmem_tile_budget_bytes is None:
        # Total resident budget for all double-buffered block buffers:
        # ~1/5 of physical VMEM (~12.8 MiB on v7x, ~25.6 MiB on v5e/v6e).
        budget = max(8 << 20, min(48 << 20, vmem_cap // 5))
    else:
        budget = int(vmem_tile_budget_bytes)

    # Padded VMEM bytes per input row for a full-spatial tile:
    #   input block  (rows, HW) -> rows x roundup(HW, 128), double-buffered
    #   output block (rows, 1)  -> rows x 128 lanes,        double-buffered
    per_row_single = 2 * hw_pad * in_item + 2 * _LANE * out_item

    x_rows = x.reshape(R, HW)  # metadata-only reshape for contiguous NCHW
    out_shape = jax.ShapeDtypeStruct((R, 1), x.dtype)

    rows_budget = budget // per_row_single
    use_single = (rows_budget >= 8) or (rows_budget >= R) or (HW <= _LANE)

    if use_single:
        # ---- single-pass path: whole spatial extent reduced in one block ----
        rows_block = min(R, max(8, rows_budget))
        if rows_block < R:
            rows_block = max(8, _round_down(rows_block, 8))
        # v7x has 2 TensorCores: aim for >=4 row blocks (>=2 per core) so the
        # "parallel" axis keeps both cores busy with pipelined DMAs, but only when
        # there is enough data for the extra per-step overhead to pay off.
        total_bytes = R * HW * in_item
        if pl.cdiv(R, rows_block) < 4 and R >= 32 and total_bytes >= (1 << 20):
            rows_block = min(rows_block, max(8, _round_down(pl.cdiv(R, 4), 8)))
        if rows_block >= R:
            rows_block = R
        n_blocks = pl.cdiv(R, rows_block)

        rows_pad = _round_up(rows_block, 8)
        resident = rows_pad * per_row_single
        vmem_limit = int(min(vmem_cap, max(32 << 20, resident + (8 << 20))))

        kernel = functools.partial(_gap_kernel_single, inv_hw=1.0 / HW)
        out = pl.pallas_call(
            kernel,
            out_shape=out_shape,
            grid_spec=pltpu.PrefetchScalarGridSpec(
                num_scalar_prefetch=0,
                grid=(n_blocks,),
                # TODO(synk): sweep pipeline_mode=pl.Buffered(3) on v7x where per-step
                # time drops to ~1-2 us and DMA turnaround bubbles become visible.
                in_specs=[pl.BlockSpec((rows_block, HW), lambda i: (i, 0))],
                out_specs=pl.BlockSpec((rows_block, 1), lambda i: (i, 0)),
            ),
            compiler_params=pltpu.CompilerParams(
                dimension_semantics=("parallel",),
                vmem_limit_bytes=vmem_limit,
            ),
        )(x_rows)
    else:
        # ---- chunked path: spatial extent too large for one block even at 8 rows;
        # stream H*W in lane-aligned chunks into an fp32 accumulator. ----
        rows_block = R if R <= 64 else 64
        rows_pad = _round_up(rows_block, 8)
        fixed = rows_pad * (2 * _LANE * out_item + _LANE * 4)  # out blocks + acc scratch
        hw_block = max(
            _LANE,
            _round_down(max(0, budget - fixed) // (2 * rows_pad * in_item), _LANE),
        )
        hw_block = min(hw_block, _round_down(HW, _LANE))  # HW > 128 here, so >= 128
        n_row_blocks = pl.cdiv(R, rows_block)
        n_hw_blocks = pl.cdiv(HW, hw_block)

        resident = rows_pad * (2 * hw_block * in_item + 2 * _LANE * out_item + _LANE * 4)
        vmem_limit = int(min(vmem_cap, max(32 << 20, resident + (8 << 20))))

        kernel = functools.partial(_gap_kernel_chunked, hw_total=HW, hw_block=hw_block)
        out = pl.pallas_call(
            kernel,
            out_shape=out_shape,
            grid_spec=pltpu.PrefetchScalarGridSpec(
                num_scalar_prefetch=0,
                grid=(n_row_blocks, n_hw_blocks),
                in_specs=[pl.BlockSpec((rows_block, hw_block), lambda i, k: (i, k))],
                out_specs=pl.BlockSpec((rows_block, 1), lambda i, k: (i, 0)),
                scratch_shapes=[pltpu.VMEM((rows_block, 1), jnp.float32)],
            ),
            compiler_params=pltpu.CompilerParams(
                dimension_semantics=("parallel", "arbitrary"),
                vmem_limit_bytes=vmem_limit,
            ),
        )(x_rows)

    return out.reshape(N, C)


if __name__ == "__main__":
    key = jax.random.PRNGKey(0)
    k1, k2, k3 = jax.random.split(key, 3)

    # Small shape consistent with the module (batch=2, channels=4, spatial=16).
    x = jax.random.normal(k1, (2, 4, 16, 16), dtype=jnp.float32)
    out = jax.block_until_ready(global_avg_pool2d(x))
    ref = jnp.mean(x, axis=(2, 3))
    assert out.shape == (2, 4)
    assert jnp.allclose(out, ref, atol=1e-5, rtol=1e-5)

    # Multi-row-block tiling path (4 "parallel" grid steps) via a small forced budget.
    x2 = jax.random.normal(k2, (16, 8, 8, 8), dtype=jnp.float32)
    out2 = jax.block_until_ready(global_avg_pool2d(x2, vmem_tile_budget_bytes=64 * 1024))
    ref2 = jnp.mean(x2, axis=(2, 3))
    assert out2.shape == (16, 8)
    assert jnp.allclose(out2, ref2, atol=1e-5, rtol=1e-5)

    # HW-chunked accumulator path (masked partial last spatial chunk) via a tiny budget.
    x3 = jax.random.normal(k3, (1, 4, 13, 13), dtype=jnp.float32)
    out3 = jax.block_until_ready(global_avg_pool2d(x3, vmem_tile_budget_bytes=8 * 1024))
    ref3 = jnp.mean(x3, axis=(2, 3))
    assert out3.shape == (1, 4)
    assert jnp.allclose(out3, ref3, atol=1e-5, rtol=1e-5)

    print("KERNEL_OK")
</pallas_src>

<mosaic_0001>
module attributes {stable_mosaic.version = 11 : i64} {
  func.func @_gap_kernel_single(%arg0: i32, %arg1: memref<8x256xf32, #tpu.memory_space<vmem>>, %arg2: memref<8x1xf32, #tpu.memory_space<vmem>>) attributes {dimension_semantics = [#tpu.dimension_semantics<parallel>], iteration_bounds = array<i64: 1>, scalar_prefetch = 0 : i64, scratch_operands = 0 : i64, tpu.core_type = #tpu.core_type<tc>, window_params = [{transform_indices = @transform_0, window_bounds = array<i64: 8, 256>}, {transform_indices = @transform_1, window_bounds = array<i64: 8, 1>}]} {
    %c0 = arith.constant 0 : index
    %c0_0 = arith.constant 0 : index
    %0 = vector.load %arg1[%c0, %c0_0] : memref<8x256xf32, #tpu.memory_space<vmem>>, vector<8x256xf32>
    %cst = arith.constant dense<0.000000e+00> : vector<8xf32>
    %1 = vector.multi_reduction <add>, %0, %cst [1] : vector<8x256xf32> to vector<8xf32>
    %2 = vector.shape_cast %1 : vector<8xf32> to vector<8x1xf32>
    %cst_1 = arith.constant 3.906250e-03 : f32
    %3 = vector.broadcast %cst_1 : f32 to vector<8x1xf32>
    %4 = arith.mulf %2, %3 : vector<8x1xf32>
    %c0_2 = arith.constant 0 : index
    %c0_3 = arith.constant 0 : index
    %5 = vector.load %arg2[%c0_2, %c0_3] : memref<8x1xf32, #tpu.memory_space<vmem>>, vector<8x1xf32>
    tpu.vector_store %arg2[%c0_2, %c0_3], %4 {strides = array<i32>} : memref<8x1xf32, #tpu.memory_space<vmem>>, vector<8x1xf32>,
    return
  }
  func.func @transform_0(%arg0: i32) -> (i32, i32) {
    %c0_i32 = arith.constant 0 : i32
    %c0_i32_0 = arith.constant 0 : i32
    return %arg0, %c0_i32 : i32, i32
  }
  func.func @transform_1(%arg0: i32) -> (i32, i32) {
    %c0_i32 = arith.constant 0 : i32
    %c0_i32_0 = arith.constant 0 : i32
    return %arg0, %c0_i32 : i32, i32
  }
}

</mosaic_0001>

<bundles_post_ra>
// kernel: tpu_custom_call.1
= control target key start
LH: loop header
LB: loop body
LE: loop exit
PB: predicated region body
PF: predicated region fallthrough
CT: control target
= control target key end

     0   :  { %6 = vsyncpa [#allocation3], 0  ;;  %s62_s9 = smov [#allocation2]   ;;  %s79_s0 = inlined_call_operand.hbm [shape: f32[8,256], index: 0, kind: input, shape index: {}]   ;;  %s80_s1 = inlined_call_operand.vmem [shape: f32[8,1], index: 1, kind: output, shape index: {}]  }
   0x1   :  { %s12_s8 = sshll.u32 %s79_s0, 4  ;;  %s14_s10 = sshll.u32 %s62_s9, 4  ;;  %s13_s8 = int_to_ptr.hbm [resolvable:$true] %s12_s8  ;;  %s15_s10 = int_to_ptr.vmem [resolvable:$true] %s14_s10 }
   0x2   :  { %17 = dma.hbm_to_vmem [thread:$0]  %s13_s8, 256, %s15_s10, [#allocation3]  }
   0x3   :  { %60 = dma.done.wait [#allocation3], 256  }
   0x4   :  { %61 = vsyncadd [#allocation3], 4294967040  ;;  %v22_v0 = vld [vmem:[#allocation2] sm:$0xff]  ;;  %v23_v1 = vld [vmem:[#allocation2 + $0x8] sm:$0xff]  ;;  %vm28_vm0 = vcmask 7168  }
   0x5   :  { %v24_v2 = vadd.f32 %v23_v1, %v22_v0 }
   0x7   :  { %25 = vadd.xlane.f32.xlu0 %v24_v2 }
  0x7a   :  { %v26_v3 = vpop.xlane.xlu0 %25 }
  0x7b   :  { %v27_v4 = vmul.f32 0.00390625, %v26_v3 }
  0x7d   :  { %29 = vst.msk [vmem:[%s80_s1] sm:$0xff] %vm28_vm0, %v27_v4 }
  0x7e   :  { %34 = vsyncpa [#allocation3], 1 }

</bundles_post_ra>
